<compile_context>
chip_gen: v7x
topology: tpu7x:2x2x1
jax: 0.10.0
libtpu: 0.0.40
codegen_flags: <defaults>
</compile_context>

<pallas_src>
import math

import jax
import jax.numpy as jnp
from jax.experimental import pallas as pl
from jax.experimental.pallas import tpu as pltpu

EPS = 1e-6
NUM_GROUPS = 32


# -----------------------------------------------------------------------------
# Kernel 1: GroupNorm apply + fused QKV projection
# -----------------------------------------------------------------------------
def _norm_qkv_kernel(x_ref, scale_ref, shift_ref, wqkv_ref, bqkv_ref, qkv_ref):
    x = x_ref[0]                                     # (tile, C) f32
    h = x * scale_ref[0] + shift_ref[0]              # GroupNorm + affine (f32 VPU math)
    qkv = jnp.dot(h.astype(jnp.bfloat16), wqkv_ref[...],
                  preferred_element_type=jnp.float32) + bqkv_ref[...]
    qkv_ref[0] = qkv.astype(jnp.bfloat16)            # (tile, 3C) bf16


# -----------------------------------------------------------------------------
# Kernel 2: flash attention (online softmax) + proj_out + residual
# -----------------------------------------------------------------------------
def _flash_attn_kernel(x_ref, q_ref, k_ref, v_ref, wp_ref, bp_ref, o_ref,
                       m_sc, l_sc, acc_sc):
    kv = pl.program_id(2)

    @pl.when(kv == 0)
    def _():
        m_sc[...] = jnp.full_like(m_sc, -jnp.inf)
        l_sc[...] = jnp.zeros_like(l_sc)
        acc_sc[...] = jnp.zeros_like(acc_sc)

    q = q_ref[0]                                     # (tq, C) bf16, pre-scaled by C**-0.5
    k = k_ref[0]                                     # (tk, C) bf16
    # NT form: contract the channel axis of both operands -> no (HW,C) transpose.
    s = jax.lax.dot_general(q, k, (((1,), (1,)), ((), ())),
                            preferred_element_type=jnp.float32)     # (tq, tk) f32

    m_prev = m_sc[...]
    m_new = jnp.maximum(m_prev, jnp.max(s, axis=-1, keepdims=True))
    alpha = jnp.exp(m_prev - m_new)                  # f32 softmax math
    p = jnp.exp(s - m_new)                           # unnormalized probabilities
    l_sc[...] = alpha * l_sc[...] + jnp.sum(p, axis=-1, keepdims=True)
    acc_sc[...] = alpha * acc_sc[...] + jnp.dot(
        p.astype(jnp.bfloat16), v_ref[0], preferred_element_type=jnp.float32)
    m_sc[...] = m_new

    @pl.when(kv == pl.num_programs(2) - 1)
    def _():
        # Deferred softmax normalization: one (tq, C) multiply, reciprocal on EUP.
        out = acc_sc[...] * pl.reciprocal(l_sc[...], approx=True)
        out = jnp.dot(out.astype(jnp.bfloat16), wp_ref[...],
                      preferred_element_type=jnp.float32) + bp_ref[...]
        o_ref[0] = x_ref[0] + out                    # residual add, f32


# -----------------------------------------------------------------------------
# Wrapper
# -----------------------------------------------------------------------------
def _pick_tile(n, cap):
    """Largest multiple-of-16 divisor of n that is <= cap (or n itself)."""
    if n <= cap:
        return n
    for t in range(cap, 15, -16):
        if n % t == 0:
            return t
    return n


def _clamp_vmem(est_bytes):
    return int(min(max(est_bytes, 16 * 2 ** 20), 64 * 2 ** 20))


def attn_block_pallas(x_nchw, params):
    """x_nchw: (B, C, H, W) float32. Returns (B, C, H, W) float32."""
    B, C, H, W = x_nchw.shape
    HW = H * W
    G = NUM_GROUPS
    assert C % G == 0, "GroupNorm(32) requires channels divisible by 32"
    # Lane-dense layout + BlockSpec slicing of the (B, HW, 3C) qkv array needs
    # C to be a multiple of 128 (true for real VQGAN widths).
    # TODO(synk): pad channels to a multiple of 128 for narrow configs (C=64).
    assert C % 128 == 0, "kernel requires C to be a multiple of 128"

    x_nchw = x_nchw.astype(jnp.float32)

    # ---- GroupNorm statistics -> per-(batch, channel) scale/shift.
    # Two-pass jnp.var avoids the E[x^2]-E[x]^2 cancellation; computed on NCHW
    # before the layout change (tiny reduce, fused by XLA with the input read).
    gamma = params["gamma"].astype(jnp.float32)
    beta = params["beta"].astype(jnp.float32)
    xg = x_nchw.reshape(B, G, (C // G) * HW)
    mean_g = jnp.mean(xg, axis=-1)                               # (B, G)
    var_g = jnp.var(xg, axis=-1)                                 # (B, G) >= 0
    inv_std_g = jax.lax.rsqrt(var_g + EPS)
    mean_c = jnp.repeat(mean_g, C // G, axis=1)                  # (B, C)
    inv_std_c = jnp.repeat(inv_std_g, C // G, axis=1)            # (B, C)
    scale_c = (inv_std_c * gamma[None, :]).reshape(B, 1, C)
    shift_c = (beta[None, :] - mean_c * inv_std_c * gamma[None, :]).reshape(B, 1, C)

    # ---- fused QKV weight (C, 3C); softmax scale folded into the q slice.
    sm_scale = 1.0 / math.sqrt(C)
    wqkv = jnp.concatenate(
        [params["wq"].T * sm_scale, params["wk"].T, params["wv"].T],
        axis=1).astype(jnp.bfloat16)                             # (C, 3C) bf16
    bqkv = jnp.concatenate(
        [params["bq"] * sm_scale, params["bk"], params["bv"]]
    ).reshape(1, 3 * C).astype(jnp.float32)                      # (1, 3C) f32
    wp = params["wp"].T.astype(jnp.bfloat16)                     # (C, C) bf16
    bp = params["bp"].reshape(1, C).astype(jnp.float32)

    # NCHW -> (B, HW, C) channels-last for lane-dense kernel layout.
    x = jnp.transpose(x_nchw.reshape(B, C, HW), (0, 2, 1))

    # ---------------- kernel 1: normalize + fused QKV, tiled over HW ----------
    t1 = _pick_tile(HW, cap=512)
    n1 = HW // t1
    k1_vmem = 2 * (t1 * C * 4 + 2 * C * 4 + C * 3 * C * 2 + 3 * C * 4
                   + t1 * 3 * C * 2) + (4 << 20)

    qkv = pl.pallas_call(
        _norm_qkv_kernel,
        out_shape=jax.ShapeDtypeStruct((B, HW, 3 * C), jnp.bfloat16),
        grid_spec=pltpu.PrefetchScalarGridSpec(
            num_scalar_prefetch=0,
            grid=(B, n1),
            in_specs=[
                pl.BlockSpec((1, t1, C), lambda b, i: (b, i, 0)),     # x
                pl.BlockSpec((1, 1, C), lambda b, i: (b, 0, 0)),      # scale
                pl.BlockSpec((1, 1, C), lambda b, i: (b, 0, 0)),      # shift
                pl.BlockSpec((C, 3 * C), lambda b, i: (0, 0)),        # wqkv
                pl.BlockSpec((1, 3 * C), lambda b, i: (0, 0)),        # bqkv
            ],
            out_specs=pl.BlockSpec((1, t1, 3 * C), lambda b, i: (b, i, 0)),
        ),
        compiler_params=pltpu.CompilerParams(
            dimension_semantics=("parallel", "parallel"),
            vmem_limit_bytes=_clamp_vmem(k1_vmem)),
    )(x, scale_c, shift_c, wqkv, bqkv)

    # ---------------- kernel 2: flash attention + proj_out + residual ---------
    tq = _pick_tile(HW, cap=256)
    tk = _pick_tile(HW, cap=256)
    nq = HW // tq
    nkv = HW // tk
    k2_vmem = (2 * (tq * C * 4 + tq * C * 2 + 2 * tk * C * 2
                    + C * C * 2 + C * 4 + tq * C * 4)
               + 2 * tq * 4 + tq * C * 4 + (4 << 20))

    out = pl.pallas_call(
        _flash_attn_kernel,
        out_shape=jax.ShapeDtypeStruct((B, HW, C), jnp.float32),
        grid_spec=pltpu.PrefetchScalarGridSpec(
            num_scalar_prefetch=0,
            grid=(B, nq, nkv),
            in_specs=[
                pl.BlockSpec((1, tq, C), lambda b, i, j: (b, i, 0)),  # x (residual)
                pl.BlockSpec((1, tq, C), lambda b, i, j: (b, i, 0)),  # q slab of qkv
                pl.BlockSpec((1, tk, C), lambda b, i, j: (b, j, 1)),  # k slab of qkv
                pl.BlockSpec((1, tk, C), lambda b, i, j: (b, j, 2)),  # v slab of qkv
                pl.BlockSpec((C, C), lambda b, i, j: (0, 0)),         # wp
                pl.BlockSpec((1, C), lambda b, i, j: (0, 0)),         # bp
            ],
            out_specs=pl.BlockSpec((1, tq, C), lambda b, i, j: (b, i, 0)),
            scratch_shapes=[
                pltpu.VMEM((tq, 1), jnp.float32),   # running max
                pltpu.VMEM((tq, 1), jnp.float32),   # running sum
                pltpu.VMEM((tq, C), jnp.float32),   # output accumulator
            ],
        ),
        compiler_params=pltpu.CompilerParams(
            dimension_semantics=("parallel", "parallel", "arbitrary"),
            vmem_limit_bytes=_clamp_vmem(k2_vmem)),
    )(x, qkv, qkv, qkv, wp, bp)

    # (B, HW, C) -> NCHW (module contract is NCHW in/out).
    return jnp.transpose(out, (0, 2, 1)).reshape(B, C, H, W)


# -----------------------------------------------------------------------------
# Pure-JAX f32 reference (mirrors the PyTorch forward, NCHW)
# -----------------------------------------------------------------------------
def attn_block_reference(x_nchw, params):
    B, C, H, W = x_nchw.shape
    G = NUM_GROUPS
    x = x_nchw.astype(jnp.float32)
    xg = x.reshape(B, G, C // G, H, W)
    mean = jnp.mean(xg, axis=(2, 3, 4), keepdims=True)
    var = jnp.var(xg, axis=(2, 3, 4), keepdims=True)
    h = ((xg - mean) / jnp.sqrt(var + EPS)).reshape(B, C, H, W)
    h = h * params["gamma"][None, :, None, None] + params["beta"][None, :, None, None]
    proj = lambda t, w, b: jnp.einsum("bchw,oc->bohw", t, w) + b[None, :, None, None]
    q = proj(h, params["wq"], params["bq"])
    k = proj(h, params["wk"], params["bk"])
    v = proj(h, params["wv"], params["bv"])
    q = q.reshape(B, C, H * W).transpose(0, 2, 1)
    k = k.reshape(B, C, H * W)
    w_ = jnp.einsum("bic,bcj->bij", q, k) * (C ** -0.5)
    w_ = jax.nn.softmax(w_, axis=2)
    v = v.reshape(B, C, H * W)
    h_ = jnp.einsum("bcj,bij->bci", v, w_).reshape(B, C, H, W)
    h_ = proj(h_, params["wp"], params["bp"])
    return x + h_


def make_params(key, C):
    ks = jax.random.split(key, 10)
    s = 1.0 / math.sqrt(C)
    return {
        "gamma": 1.0 + 0.1 * jax.random.normal(ks[0], (C,), jnp.float32),
        "beta": 0.1 * jax.random.normal(ks[1], (C,), jnp.float32),
        "wq": s * jax.random.normal(ks[2], (C, C), jnp.float32),
        "bq": 0.1 * jax.random.normal(ks[3], (C,), jnp.float32),
        "wk": s * jax.random.normal(ks[4], (C, C), jnp.float32),
        "bk": 0.1 * jax.random.normal(ks[5], (C,), jnp.float32),
        "wv": s * jax.random.normal(ks[6], (C, C), jnp.float32),
        "bv": 0.1 * jax.random.normal(ks[7], (C,), jnp.float32),
        "wp": s * jax.random.normal(ks[8], (C, C), jnp.float32),
        "bp": 0.1 * jax.random.normal(ks[9], (C,), jnp.float32),
    }


if __name__ == "__main__":
    key = jax.random.PRNGKey(0)
    kx, kp = jax.random.split(key)

    # Small but kernel-friendly shapes: C multiple of 32 (GroupNorm) and 128 (lanes).
    B, C, H, W = 2, 128, 8, 8
    x = jax.random.normal(kx, (B, C, H, W), jnp.float32)
    params = make_params(kp, C)

    out = attn_block_pallas(x, params)
    out = jax.block_until_ready(out)

    ref = attn_block_reference(x, params)
    assert out.shape == (B, C, H, W)
    max_err = float(jnp.max(jnp.abs(out - ref)))
    # bf16 MXU operands (per perf review) => tolerance looser than pure f32.
    assert jnp.allclose(out, ref, rtol=5e-2, atol=5e-2), f"max err {max_err}"

    print("KERNEL_OK")
</pallas_src>

<mosaic_0001>
module attributes {stable_mosaic.version = 11 : i64} {
  func.func @_norm_qkv_kernel(%arg0: i32, %arg1: i32, %arg2: memref<1x64x128xf32, #tpu.memory_space<vmem>>, %arg3: memref<1x1x128xf32, #tpu.memory_space<vmem>>, %arg4: memref<1x1x128xf32, #tpu.memory_space<vmem>>, %arg5: memref<128x384xbf16, #tpu.memory_space<vmem>>, %arg6: memref<1x384xf32, #tpu.memory_space<vmem>>, %arg7: memref<1x64x384xbf16, #tpu.memory_space<vmem>>) attributes {dimension_semantics = [#tpu.dimension_semantics<parallel>, #tpu.dimension_semantics<parallel>], iteration_bounds = array<i64: 2, 1>, scalar_prefetch = 0 : i64, scratch_operands = 0 : i64, tpu.core_type = #tpu.core_type<tc>, window_params = [{transform_indices = @transform_0, window_bounds = array<i64: 1, 64, 128>}, {transform_indices = @transform_1, window_bounds = array<i64: 1, 1, 128>}, {transform_indices = @transform_2, window_bounds = array<i64: 1, 1, 128>}, {pipeline_mode = #tpu.pipeline_mode<synchronous>, transform_indices = @transform_3, window_bounds = array<i64: 128, 384>}, {pipeline_mode = #tpu.pipeline_mode<synchronous>, transform_indices = @transform_4, window_bounds = array<i64: 1, 384>}, {transform_indices = @transform_5, window_bounds = array<i64: 1, 64, 384>}]} {
    %c0 = arith.constant 0 : index
    %c0_0 = arith.constant 0 : index
    %c0_1 = arith.constant 0 : index
    %0 = vector.load %arg2[%c0, %c0_0, %c0_1] : memref<1x64x128xf32, #tpu.memory_space<vmem>>, vector<1x64x128xf32>
    %1 = vector.shape_cast %0 : vector<1x64x128xf32> to vector<64x128xf32>
    %c0_2 = arith.constant 0 : index
    %c0_3 = arith.constant 0 : index
    %c0_4 = arith.constant 0 : index
    %2 = vector.load %arg3[%c0_2, %c0_3, %c0_4] : memref<1x1x128xf32, #tpu.memory_space<vmem>>, vector<1x1x128xf32>
    %3 = vector.shape_cast %2 : vector<1x1x128xf32> to vector<1x128xf32>
    %4 = vector.broadcast %3 : vector<1x128xf32> to vector<64x128xf32>
    %5 = arith.mulf %1, %4 : vector<64x128xf32>
    %c0_5 = arith.constant 0 : index
    %c0_6 = arith.constant 0 : index
    %c0_7 = arith.constant 0 : index
    %6 = vector.load %arg4[%c0_5, %c0_6, %c0_7] : memref<1x1x128xf32, #tpu.memory_space<vmem>>, vector<1x1x128xf32>
    %7 = vector.shape_cast %6 : vector<1x1x128xf32> to vector<1x128xf32>
    %8 = vector.broadcast %7 : vector<1x128xf32> to vector<64x128xf32>
    %9 = arith.addf %5, %8 : vector<64x128xf32>
    %10 = arith.truncf %9 : vector<64x128xf32> to vector<64x128xbf16>
    %c0_8 = arith.constant 0 : index
    %c0_9 = arith.constant 0 : index
    %11 = vector.load %arg5[%c0_8, %c0_9] : memref<128x384xbf16, #tpu.memory_space<vmem>>, vector<128x384xbf16>
    %cst = arith.constant dense<0.000000e+00> : vector<64x384xf32>
    %12 = tpu.matmul %10, %11, %cst {dimension_numbers = #tpu.dot_dimension_numbers<[1], [0], [0], [1], [0, 0, 1, 1], [], []>} : vector<64x128xbf16>, vector<128x384xbf16>, vector<64x384xf32> -> vector<64x384xf32>
    %c0_10 = arith.constant 0 : index
    %c0_11 = arith.constant 0 : index
    %13 = vector.load %arg6[%c0_10, %c0_11] : memref<1x384xf32, #tpu.memory_space<vmem>>, vector<1x384xf32>
    %14 = vector.broadcast %13 : vector<1x384xf32> to vector<64x384xf32>
    %15 = arith.addf %12, %14 : vector<64x384xf32>
    %16 = arith.truncf %15 : vector<64x384xf32> to vector<64x384xbf16>
    %c0_12 = arith.constant 0 : index
    %c0_13 = arith.constant 0 : index
    %c0_14 = arith.constant 0 : index
    %17 = vector.load %arg7[%c0_12, %c0_13, %c0_14] : memref<1x64x384xbf16, #tpu.memory_space<vmem>>, vector<1x64x384xbf16>
    %18 = vector.shape_cast %17 : vector<1x64x384xbf16> to vector<64x384xbf16>
    %19 = vector.shape_cast %16 : vector<64x384xbf16> to vector<1x64x384xbf16>
    tpu.vector_store %arg7[%c0_12, %c0_13, %c0_14], %19 {strides = array<i32>} : memref<1x64x384xbf16, #tpu.memory_space<vmem>>, vector<1x64x384xbf16>,
    return
  }
  func.func @transform_0(%arg0: i32, %arg1: i32) -> (i32, i32, i32) {
    %c0_i32 = arith.constant 0 : i32
    %c0_i32_0 = arith.constant 0 : i32
    return %arg0, %arg1, %c0_i32 : i32, i32, i32
  }
  func.func @transform_1(%arg0: i32, %arg1: i32) -> (i32, i32, i32) {
    %c0_i32 = arith.constant 0 : i32
    %c0_i32_0 = arith.constant 0 : i32
    %c0_i32_1 = arith.constant 0 : i32
    return %arg0, %c0_i32, %c0_i32_0 : i32, i32, i32
  }
  func.func @transform_2(%arg0: i32, %arg1: i32) -> (i32, i32, i32) {
    %c0_i32 = arith.constant 0 : i32
    %c0_i32_0 = arith.constant 0 : i32
    %c0_i32_1 = arith.constant 0 : i32
    return %arg0, %c0_i32, %c0_i32_0 : i32, i32, i32
  }
  func.func @transform_3(%arg0: i32, %arg1: i32) -> (i32, i32) {
    %c0_i32 = arith.constant 0 : i32
    %c0_i32_0 = arith.constant 0 : i32
    %c0_i32_1 = arith.constant 0 : i32
    return %c0_i32, %c0_i32_0 : i32, i32
  }
  func.func @transform_4(%arg0: i32, %arg1: i32) -> (i32, i32) {
    %c0_i32 = arith.constant 0 : i32
    %c0_i32_0 = arith.constant 0 : i32
    %c0_i32_1 = arith.constant 0 : i32
    return %c0_i32, %c0_i32_0 : i32, i32
  }
  func.func @transform_5(%arg0: i32, %arg1: i32) -> (i32, i32, i32) {
    %c0_i32 = arith.constant 0 : i32
    %c0_i32_0 = arith.constant 0 : i32
    return %arg0, %arg1, %c0_i32 : i32, i32, i32
  }
}

</mosaic_0001>

<bundles_post_ra>
// kernel: tpu_custom_call.1
= control target key start
LH: loop header
LB: loop body
LE: loop exit
PB: predicated region body
PF: predicated region fallthrough
CT: control target
= control target key end

     0   :  { %10 = vsyncpa [#allocation3], 0  ;;  %s1585_s0 = inlined_call_operand.hbm [shape: f32[2,64,128], index: 0, kind: input, shape index: {}]   ;;  %s1586_s1 = inlined_call_operand.vmem [shape: f32[2,1,128], index: 1, kind: input, shape index: {}]   ;;  %s1587_s2 = inlined_call_operand.vmem [shape: f32[2,1,128], index: 2, kind: input, shape index: {}]   ;;  %s1588_s3 = inlined_call_operand.hbm [shape: bf16[128,384], index: 3, kind: input, shape index: {}]   ;;  %s1589_s4 = inlined_call_operand.vmem [shape: f32[1,384], index: 4, kind: input, shape index: {}]   ;;  %s1590_s5 = inlined_call_operand.hbm [shape: bf16[2,64,384], index: 5, kind: output, shape index: {}]  }
   0x1   :  { %12 = vsyncpa [#allocation3 + $0x1], 0 }
   0x2   :  { %13 = vsyncpa [#allocation6], 0 }
   0x3   :  { %14 = vsyncpa [#allocation4], 0 }
   0x4   :  { %16 = vsyncpa [#allocation4 + $0x1], 0  ;;  %s1301_s18 = smov 0   ;;  %s1303_s19 = smov 0  }
   0x5   :  { %s1305_s20 = smov 0   ;;  %s1307_s21 = smov 0  }
   0x6   :  { %s1309_s22 = smov 0   ;;  %s1311_s23 = smov 0  }
   0x7 LB: > { %s892_s24 = sadd.s32 4294967295, %s1259_s23   ;;  %s893_s25 = sadd.s32 4294967294, %s1259_s23   ;;  %s1259_s23 = sphi %s1311_s23, %s22_s23   ;;  %s1255_s22 = sphi %s1309_s22, %s1614_s22   ;;  %s1251_s21 = sphi %s1307_s21, %s1613_s21   ;;  %s1247_s20 = sphi %s1305_s20, %s1612_s20   ;;  %s1243_s19 = sphi %s1303_s19, %s1611_s19   ;;  %s1239_s18 = sphi %s1301_s18, %s1610_s18  }
   0x8   : > { %p56_p0 = scmp.ne.s32.totalorder %s1243_s19, %s1239_s18  ;;  %p1335_p1 = scmp.eq.s32.totalorder %s892_s24, 0 }
   0x9   : > { %p1339_p2 = scmp.eq.s32.totalorder %s892_s24, 1  ;;  %p182_p3 = scmp.eq.s32.totalorder %s893_s25, 1 }
   0xa   : > { %s1595_s26 = scalar_select %p1335_p1, 1, 0 }
   0xb   : > { %s1596_s27 = scalar_select %p1339_p2, 1, 0 }
   0xc   : > { %p1345_p4 = por %p1335_p1, %p56_p0  ;;  %p894_p5 = scmp.ge.s32.totalorder %s1259_s23, 1 }
   0xd   : > { %p1350_p6 = por %p182_p3, %p56_p0  ;;  %p189_p7 = scmp.lt.s32.totalorder %s1259_s23, 3 }
   0xe   : > { %s1597_s28 = scalar_select %p1345_p4, 1, 0 }
   0xf   : > { %s1598_s29 = scalar_select %p1350_p6, 1, 0 }
  0x10   : > { %p1355_p8 = pnand %p894_p5, %p189_p7  ;;  %s1261_s6 = smov [#allocation5]  }
  0x11   : > { %s201_s7 = sshll.u32 %s1261_s6, 4  ;;  %s34_s9 = sadd.s32 1, %s1255_s22  ;;  %s202_s7 = int_to_ptr.vmem [resolvable:$true] %s201_s7 }
  0x12   : > { %s1599_s30 = scalar_select %p1355_p8, 1, 0 }
  0x13   : > { %p1011_p9 = pneg %p1355_p8  ;;  %s1115_s12 = scalar_lea.hbm %s1588_s3, 3072 }
  0x14   : > { %p1116_p12 = scmp.ne.s32.totalorder %s1588_s3, %s1115_s12  ;;  %p1122_p5 = scmp.lt.u32.totalorder %s1115_s12, %s1588_s3 }
  0x15   : > { %p1364_p11 = pnand %p1011_p9, %p1335_p1 }
  0x17   : > { %p1117_p13 = pneg %p1364_p11 }
  0x19   : > { %p1118_p0 = pnand %p1117_p13, %p1116_p12 }
  0x1b   : > { %p1119_p3 = pneg %p1118_p0 }
  0x1d   : > { %p1124_p7 = pnand %p1122_p5, %p1119_p3 }
  0x1f   : > { %1127 = shalt.err (!%p1124_p7)
}
  0x20   : > { %s1128_s17 = scalar_lea.vmem %s202_s7, 3072  ;;  %p1136_p1 = scmp.lt.s32.totalorder %s202_s7, %s202_s7 }
  0x21   : > { %p1129_p9 = scmp.ne.s32.totalorder %s202_s7, %s1128_s17  ;;  %p1137_p4 = scmp.lt.s32.totalorder %s1128_s17, %s1128_s17 }
  0x23   : > { %p1131_p10 = pnand %p1129_p9, %p1117_p13  ;;  %p1138_p8 = por %p1137_p4, %p1136_p1 }
  0x25   : > { %p1132_p6 = pneg %p1131_p10 }
  0x27   : > { %p1139_p2 = pnand %p1138_p8, %p1132_p6 }
  0x29   : > { %1142 = shalt.err (!%p1139_p2)
}
  0x2a   : > { %s1262_s24 = smov 192   ;;  %s1263_s25 = smov 12  }
  0x2b   : > { %1014 = dma.hbm_to_vmem [thread:$0]  (!%p1364_p11), %s1588_s3, 3072, %s202_s7, [#allocation6], %s1262_s24, %s1262_s24, %s1263_s25  }
  0x2c   : > { %p36_p1 = scmp.ge.s32.totalorder %s34_s9, 2  ;;  %s43_s11 = sadd.s32 1, %s1247_s20 }
  0x2d   : > { %p50_p2 = scmp.ne.s32.totalorder %s1247_s20, %s1243_s19  ;;  %p51_p4 = scmp.eq.s32.totalorder %s1259_s23, 0 }
  0x2e   : > { %s1616_s9 = smov (%p36_p1, %s34_s9), 0  ;;  %p1602_p8 = scmp.ne.s32.totalorder %s1596_s27, 0 }
  0x2f   : > { %p1391_p6 = por %p51_p4, %p50_p2  ;;  %s38_s8 = ssub.s32 %s1255_s22, %s1616_s9 }
  0x30   : > { %p1397_p10 = por %p1602_p8, %p50_p2  ;;  %p1024_p12 = scmp.lt.s32.totalorder %s1259_s23, 2 }
  0x31   : > { %p41_p11 = scmp.eq.s32.totalorder %s38_s8, 0  ;;  %s218_s7 = sand.u32 1, %s1247_s20  }
  0x32   : > { %s897_s14 = sshll.u32 %s218_s7, 6  ;;  %s948_s16 = sshll.u32 %s1255_s22, 10 }
  0x33   : > { %s1406_s15 = scalar_select %p41_p11, %s1247_s20, %s43_s11  }
  0x34   : > { %s1412_s25 = scalar_lea.hbm %s1585_s0, %s948_s16  ;;  %s222_s27 = scalar_lea.vmem [#allocation2], %s897_s14 }
  0x35   : > { %s231_s6 = sshll.u32 %s222_s27, 4  ;;  %p1418_p13 = pnand %p1024_p12, %p1391_p6  ;;  %s1414_s6 = int_to_ptr.vmem [resolvable:$true] %s231_s6 }
  0x36   : > { %s1422_s11 = scalar_lea.sflag [#allocation3], %s218_s7  ;;  %s1143_s8 = scalar_lea.hbm %s1412_s25, 1024 }
  0x37   : > { %p1144_p0 = scmp.ne.s32.totalorder %s1412_s25, %s1143_s8  ;;  %p1145_p3 = pneg %p1418_p13 }
  0x38   : > { %s1148_s12 = scalar_lea.hbm %s1585_s0, 2048  ;;  %p1149_p9 = scmp.lt.u32.totalorder %s1412_s25, %s1585_s0 }
  0x39   : > { %p1146_p5 = pnand %p1145_p3, %p1144_p0  ;;  %p1150_p1 = scmp.lt.u32.totalorder %s1148_s12, %s1143_s8 }
  0x3a   : > { %p1152_p4 = scmp.lt.u32.totalorder %s1143_s8, %s1412_s25 }
  0x3b   : > { %p1147_p7 = pneg %p1146_p5  ;;  %p1151_p2 = por %p1150_p1, %p1149_p9 }
  0x3d   : > { %p1153_p6 = por %p1152_p4, %p1151_p2 }
  0x3f   : > { %p1154_p8 = pnand %p1153_p6, %p1147_p7 }
  0x41   : > { %1157 = shalt.err (!%p1154_p8)
}
  0x42   : > { %s1158_s7 = scalar_lea.vmem %s1414_s6, 1024  ;;  %s1264_s27 = smov [#allocation2]  }
  0x43   : > { %p1159_p12 = scmp.ne.s32.totalorder %s1414_s6, %s1158_s7  ;;  %s1163_s14 = sshll.u32 %s1264_s27, 4  ;;  %s1164_s14 = int_to_ptr.vmem [resolvable:$false] %s1163_s14 }
  0x44   : > { %s1165_s16 = scalar_lea.vmem %s1164_s14, 2048  ;;  %p1166_p5 = scmp.lt.s32.totalorder %s1414_s6, %s1164_s14 }
  0x45   : > { %p1161_p11 = pnand %p1159_p12, %p1145_p3  ;;  %p1167_p9 = scmp.lt.s32.totalorder %s1165_s16, %s1158_s7 }
  0x47   : > { %p1162_p0 = pneg %p1161_p11  ;;  %p1168_p1 = por %p1167_p9, %p1166_p5 }
  0x49   : > { %p1169_p2 = pnand %p1168_p1, %p1162_p0 }
  0x4b   : > { %1172 = shalt.err (!%p1169_p2)
}
  0x4c   : > { %s1265_s8 = smov 128   ;;  %s1266_s12 = smov 8  }
  0x4d   : > { %1018 = dma.hbm_to_vmem [thread:$0]  (!%p1418_p13), %s1412_s25, 1024, %s1414_s6, %s1422_s11, %s1265_s8, %s1265_s8, %s1266_s12  }
  0x4e   : > { %p1605_p3 = scmp.ne.s32.totalorder %s1599_s30, 0 }
  0x4f   : > { %s1453_s17 = sand.u32 (!%p1605_p3), 1, %s1243_s19   ;;  %p1606_p7 = scmp.ne.s32.totalorder (!%p1605_p3), %s1597_s28, 0 }
  0x50   : > { %255 = sbr.rel (%p1605_p3) target bundleno = 382 (0x17e), region = 40  ;;  %s901_s24 = sshll.u32 (!%p1605_p3), %s1453_s17, 6 }
  0x51   : > { %s258_s7 = scalar_lea.sflag (!%p1605_p3), [#allocation3], %s1453_s17  ;;  %s1457_s27 = scalar_lea.vmem (!%p1605_p3), [#allocation2], %s901_s24 }
  0x57   : > { %1226 = dma.done.wait (%p1606_p7), %s258_s7, 1024  }
  0x58   : > { %1228 = vsyncadd (%p1606_p7), %s258_s7, 4294966272  ;;  %p1607_p13 = scmp.ne.s32.totalorder %s1595_s26, 0 }
  0x5a   : > { %1230 = dma.done.wait (%p1607_p13), [#allocation6], 3072  }
  0x5b   : > { %1232 = vsyncadd (%p1607_p13), [#allocation6], 4294964224  ;;  %v1267_v0 = vmov 0   ;;  %v1083_v1 = vld [vmem:[#allocation5 + $0x4] ss:$12 sps:$4 sm:$0xff]   ;;  %p299_p4 = scmp.lt.s32.totalorder %s1251_s21, 1  ;;  %v383_v55 = vlaneseq }
  0x5c   : > { %558 = vmatprep.mubr.bf16.mxu0 %v1267_v0  ;;  %v1085_v2 = vld [vmem:[#allocation5] ss:$12 sps:$4 sm:$0xff]   ;;  %526 = vmatprep.subr.bf16.mxu0 %v1083_v1  ;;  %v1086_v3 = vld [vmem:[#allocation5 + $0x1c] ss:$12 sps:$4 sm:$0xff]   ;;  %v1088_v4 = vld [vmem:[#allocation5 + $0x18] ss:$12 sps:$4 sm:$0xff]  }
  0x5d   : > { %527 = vmatpush1.bf16.msra.mxu0 %v1085_v2  ;;  %v1089_v5 = vld [vmem:[#allocation5 + $0x34] ss:$12 sps:$4 sm:$0xff]   ;;  %v1091_v7 = vld [vmem:[#allocation5 + $0x30] ss:$12 sps:$4 sm:$0xff]   ;;  %v1092_v8 = vld [vmem:[#allocation5 + $0x4c] ss:$12 sps:$4 sm:$0xff]  }
  0x5e   : > { %528 = vmatprep.subr.bf16.mxu0 %v1086_v3  ;;  %v1095_v6 = vld [vmem:[#allocation5 + $0x8] ss:$12 sps:$4 sm:$0xff]   ;;  %v1099_v9 = vld [vmem:[#allocation5 + $0x20] ss:$12 sps:$4 sm:$0xff]   ;;  %s300_s26 = scalar_select %p299_p4, %s1251_s21, 1  ;;  %v310_v34 = vld [vmem:[%s1457_s27 + $0x18] sm:$0xff] }
  0x5f   : > { %977 = vmatprep.subr.bf16.mxu1 %v1095_v6  ;;  %v1103_v10 = vld [vmem:[#allocation5 + $0x38] ss:$12 sps:$4 sm:$0xff]   ;;  %v1094_v11 = vld [vmem:[#allocation5 + $0x48] ss:$12 sps:$4 sm:$0xff]   ;;  %v1098_v13 = vld [vmem:[#allocation5 + $0x60] ss:$12 sps:$4 sm:$0xff]  }
  0x60   : > { %978 = vmatpush3.bf16.msra.mxu1 %v1095_v6  ;;  %v1096_v12 = vld [vmem:[#allocation5 + $0x64] ss:$12 sps:$4 sm:$0xff]   ;;  %s301_s25 = scalar_lea.vmem %s1586_s1, %s300_s26  ;;  %s304_s11 = scalar_lea.vmem %s1587_s2, %s300_s26  ;;  %v1100_v15 = vld [vmem:[#allocation5 + $0x7c] ss:$12 sps:$4 sm:$0xff]   ;;  %v1104_v26 = vld [vmem:[#allocation5 + $0x94] ss:$12 sps:$4 sm:$0xff]  }
  0x61   : > { %529 = vmatpush1.bf16.msra.mxu0 %v1088_v4  ;;  %979 = vmatprep.subr.bf16.mxu1 %v1099_v9  ;;  %v1107_v14 = vld [vmem:[#allocation5 + $0x50] ss:$12 sps:$4 sm:$0xff]   ;;  %v307_v16 = vld [vmem:[%s1457_s27] sm:$0xff]  ;;  %v308_v17 = vld [vmem:[%s1457_s27 + $0x8] sm:$0xff]  ;;  %v384_v56 = vshrl.u32 %v383_v55, 7  ;;  %s1001_s8 = smul.u32 96, %s1453_s17 }
  0x62   : > { %530 = vmatprep.subr.bf16.mxu0 %v1089_v5  ;;  %v903_v18 = vld [vmem:[%s301_s25] ss:$0 sm:$0xff]  ;;  %v1111_v22 = vld [vmem:[#allocation5 + $0x68] ss:$12 sps:$4 sm:$0xff]   ;;  %v1102_v23 = vld [vmem:[#allocation5 + $0x78] ss:$12 sps:$4 sm:$0xff]  }
  0x63   : > { %v904_v19 = vld [vmem:[%s304_s11] ss:$0 sm:$0xff]  ;;  %v322_v20 = vmul.f32 %v903_v18, %v307_v16  ;;  %v323_v21 = vmul.f32 %v903_v18, %v308_v17  ;;  %v1106_v29 = vld [vmem:[#allocation5 + $0x90] ss:$12 sps:$4 sm:$0xff]   ;;  %v1108_v30 = vld [vmem:[#allocation5 + $0xac] ss:$12 sps:$4 sm:$0xff]   ;;  %v325_v38 = vmul.f32 %v903_v18, %v310_v34 }
  0x64   : > { %980 = vmatpush3.bf16.msra.mxu1 %v1099_v9  ;;  %v1112_v28 = vld [vmem:[#allocation5 + $0x80] ss:$12 sps:$4 sm:$0xff]   ;;  %v1113_v31 = vld [vmem:[#allocation5 + $0x98] ss:$12 sps:$4 sm:$0xff]   ;;  %v1110_v32 = vld [vmem:[#allocation5 + $0xa8] ss:$12 sps:$4 sm:$0xff]  }
  0x65   : > { %531 = vmatpush1.bf16.msra.mxu0 %v1091_v7  ;;  %981 = vmatprep.subr.bf16.mxu1 %v1103_v10  ;;  %v337_v24 = vadd.f32 %v904_v19, %v322_v20  ;;  %v338_v25 = vadd.f32 %v904_v19, %v323_v21  ;;  %v309_v33 = vld [vmem:[%s1457_s27 + $0x10] sm:$0xff]  ;;  %v311_v35 = vld [vmem:[%s1457_s27 + $0x20] sm:$0xff]  ;;  %v312_v36 = vld [vmem:[%s1457_s27 + $0x28] sm:$0xff]  ;;  %v340_v45 = vadd.f32 %v904_v19, %v325_v38  ;;  %v385_v57 = vsub.s32 0, %v384_v56  ;;  %s1499_s12 = scalar_lea.vmem [#allocation7], %s1001_s8  ;;  %s1002_s24 = smul.u32 1536, %s1251_s21 }
  0x66   : > { %532 = vmatprep.subr.bf16.mxu0 %v1092_v8  ;;  %v324_v37 = vmul.f32 %v903_v18, %v309_v33  ;;  %v1114_v39 = vld [vmem:[#allocation5 + $0xb0] ss:$12 sps:$4 sm:$0xff]   ;;  %v326_v40 = vmul.f32 %v903_v18, %v311_v35  ;;  %v327_v41 = vmul.f32 %v903_v18, %v312_v36  ;;  %v381_v58 = vld [vmem:[%s1589_s4] sm:$0x7]  ;;  %v389_v59 = vsub.s32 1, %v384_v56  ;;  %s777_s7 = sshll.u32 %s1499_s12, 4  ;;  %s1534_s7 = int_to_ptr.vmem [resolvable:$true] %s777_s7 }
  0x67   : > { %v345_v27 = vpack.c.bf16 %v338_v25, %v337_v24  ;;  %v313_v42 = vld [vmem:[%s1457_s27 + $0x30] sm:$0xff]  ;;  %v314_v43 = vld [vmem:[%s1457_s27 + $0x38] sm:$0xff]  ;;  %v1490_v60 = vrot.slane %v381_v58, %v385_v57  ;;  %v393_v62 = vsub.s32 2, %v384_v56  ;;  %s1532_s28 = scalar_lea.hbm %s1590_s5, %s1002_s24  ;;  %s761_s21 = scalar_lea.sflag [#allocation4], %s1453_s17 }
  0x68   : > { %982 = vmatpush3.bf16.msra.mxu1 %v1103_v10  ;;  %v339_v44 = vadd.f32 %v904_v19, %v324_v37  ;;  %v341_v46 = vadd.f32 %v904_v19, %v326_v40  ;;  %v342_v47 = vadd.f32 %v904_v19, %v327_v41  ;;  %v328_v48 = vmul.f32 %v903_v18, %v313_v42  ;;  %s1173_s30 = scalar_lea.vmem %s1534_s7, 1536  ;;  %s1268_s25 = smov [#allocation7]  }
  0x69   : > { %533 = vmatpush1.bf16.msra.mxu0 %v1094_v11  ;;  %983 = vmatprep.subr.bf16.mxu1 %v1107_v14  ;;  %v329_v49 = vmul.f32 %v903_v18, %v314_v43  ;;  %v1492_v61 = vrot.slane %v381_v58, %v389_v59  ;;  %v394_v6 = vrot.slane %v381_v58, %v393_v62  ;;  %p1174_p6 = scmp.ne.s32.totalorder %s1534_s7, %s1173_s30  ;;  %s1177_s6 = sshll.u32 %s1268_s25, 4  ;;  %s1178_s6 = int_to_ptr.vmem [resolvable:$false] %s1177_s6 }
  0x6a   : > { %534 = vmatprep.subr.bf16.mxu0 %v1096_v12  ;;  %993 = vmatprep.mubr.bf16.mxu1 %v345_v27  ;;  %v346_v50 = vpack.c.bf16 %v340_v45, %v339_v44  ;;  %v347_v51 = vpack.c.bf16 %v342_v47, %v341_v46  ;;  %v343_v52 = vadd.f32 %v904_v19, %v328_v48  ;;  %s1179_s10 = scalar_lea.vmem %s1178_s6, 3072  ;;  %p1180_p11 = scmp.lt.s32.totalorder %s1534_s7, %s1178_s6 }
  0x6b   : > { %v344_v53 = vadd.f32 %v904_v19, %v329_v49  ;;  %p1175_p8 = pnand %p1174_p6, %p1397_p10  ;;  %p1181_p0 = scmp.lt.s32.totalorder %s1179_s10, %s1173_s30 }
  0x6c   : > { %984 = vmatpush3.bf16.msra.mxu1 %v1107_v14 }
  0x6d   : > { %535 = vmatpush1.bf16.msra.mxu0 %v1098_v13  ;;  %985 = vmatprep.subr.bf16.mxu1 %v1111_v22  ;;  %v348_v54 = vpack.c.bf16 %v344_v53, %v343_v52  ;;  %p1176_p12 = pneg %p1175_p8  ;;  %p1182_p5 = por %p1181_p0, %p1180_p11 }
  0x6e   : > { %536 = vmatprep.subr.bf16.mxu0 %v1100_v15 }
  0x6f   : > { %p1183_p9 = pnand %p1182_p5, %p1176_p12 }
  0x70   : > { %986 = vmatpush3.bf16.msra.mxu1 %v1111_v22 }
  0x71   : > { %537 = vmatpush1.bf16.msra.mxu0 %v1102_v23  ;;  %987 = vmatprep.subr.bf16.mxu1 %v1112_v28 }
  0x72   : > { %538 = vmatprep.subr.bf16.mxu0 %v1104_v26 }
  0x74   : > { %988 = vmatpush3.bf16.msra.mxu1 %v1112_v28 }
  0x75   : > { %539 = vmatpush1.bf16.msra.mxu0 %v1106_v29  ;;  %989 = vmatprep.subr.bf16.mxu1 %v1113_v31 }
  0x76   : > { %540 = vmatprep.subr.bf16.mxu0 %v1108_v30 }
  0x78   : > { %990 = vmatpush3.bf16.msra.mxu1 %v1113_v31 }
  0x79   : > { %541 = vmatpush1.bf16.msra.mxu0 %v1110_v32  ;;  %991 = vmatprep.subr.bf16.mxu1 %v1114_v39 }
  0x7c   : > { %559 = vmatmul.mubr.bf16.vlgmr.msra.gmra.mrb[0].mxu0 %v345_v27  ;;  %992 = vmatpush3.bf16.msra.mxu1 %v1114_v39 }
  0x7d   : > { %568 = vmatprep.mubr.bf16.mxu0 %v1267_v0 }
  0x7f   : > { %994 = vmatmul.mubr.bf16.vlgmr.msra.gmra.mrb[0].mxu1 %v346_v50 }
  0x80   : > { %997 = vmatprep.mubr.bf16.mxu1 %v347_v51 }
  0x84   : > { %569 = vmatmul.mubr.bf16.gmra.mrb[4].mxu0 %v346_v50 }
  0x85   : > { %578 = vmatprep.mubr.bf16.mxu0 %v1267_v0 }
  0x87   : > { %998 = vmatmul.mubr.bf16.gmra.mrb[4].mxu1 %v348_v54 }
  0x8c   : > { %579 = vmatmul.mubr.bf16.gmra.mrb[8].mxu0 %v347_v51 }
  0x8d   : > { %588 = vmatprep.mubr.bf16.mxu0 %v1267_v0 }
  0x94   : > { %589 = vmatmul.mubr.bf16.gmra.mrb[12].mxu0 %v348_v54 }
 0x14f   : > { %v560_v63 = vpop.f32.mrb[0].mxu0 }
 0x150   : > { %v561_v1 = vadd.f32 %v560_v63, %v1490_v60  ;;  %v562_v2 = vpop.f32.mrb[1].mxu0 }
 0x151   : > { %v563_v0 = vadd.f32 %v562_v2, %v1492_v61  ;;  %v564_v3 = vpop.f32.mrb[2].mxu0 }
 0x152   : > { %v565_v4 = vadd.f32 %v564_v3, %v1490_v60  ;;  %v566_v5 = vpop.f32.mrb[3].mxu0  ;;  %v995_v10 = vpop.f32.mrb[0].mxu1 }
 0x153   : > { %v949_v7 = vpack.c.bf16 %v563_v0, %v561_v1  ;;  %v567_v8 = vadd.f32 %v566_v5, %v1492_v61  ;;  %v642_v11 = vadd.f32 %v995_v10, %v394_v6  ;;  %v633_v12 = vpop.f32.mrb[1].mxu1 }
 0x154   : > { %v634_v14 = vadd.f32 %v633_v12, %v394_v6  ;;  %v996_v15 = vpop.f32.mrb[2].mxu1 }
 0x155   : > { %744 = vst [vmem:[%s1499_s12] sm:$0xff] %v949_v7  ;;  %v951_v9 = vpack.c.bf16 %v567_v8, %v565_v4  ;;  %v954_v18 = vpack.c.bf16 %v642_v11, %v642_v11  ;;  %v645_v19 = vadd.f32 %v996_v15, %v394_v6  ;;  %v636_v20 = vpop.f32.mrb[3].mxu1 }
 0x156   : > { %v950_v23 = vpack.c.bf16 %v634_v14, %v634_v14  ;;  %v637_v24 = vadd.f32 %v636_v20, %v394_v6 }
 0x157   : > { %746 = vst [vmem:[%s1499_s12 + $0xc] sm:$0xff] %v951_v9  ;;  %v570_v13 = vpop.f32.mrb[4].mxu0  ;;  %749 = vst [vmem:[%s1499_s12 + $0x20] sm:$0xf] %v954_v18  ;;  %v956_v27 = vpack.c.bf16 %v645_v19, %v645_v19 }
 0x158   : > { %v571_v16 = vadd.f32 %v570_v13, %v1490_v60  ;;  %v572_v17 = vpop.f32.mrb[5].mxu0  ;;  %745 = vst [vmem:[%s1499_s12 + $0x8] sm:$0xf] %v950_v23  ;;  %v952_v30 = vpack.c.bf16 %v637_v24, %v637_v24 }
 0x159   : > { %v573_v21 = vadd.f32 %v572_v17, %v1492_v61  ;;  %v574_v22 = vpop.f32.mrb[6].mxu0  ;;  %751 = vst [vmem:[%s1499_s12 + $0x2c] sm:$0xf] %v956_v27 }
 0x15a   : > { %v575_v25 = vadd.f32 %v574_v22, %v1490_v60  ;;  %v576_v26 = vpop.f32.mrb[7].mxu0  ;;  %747 = vst [vmem:[%s1499_s12 + $0x14] sm:$0xf] %v952_v30  ;;  %v999_v32 = vpop.f32.mrb[4].mxu1 }
 0x15b   : > { %v953_v28 = vpack.c.bf16 %v573_v21, %v571_v16  ;;  %v577_v29 = vadd.f32 %v576_v26, %v1492_v61  ;;  %v658_v33 = vadd.f32 %v999_v32, %v394_v6  ;;  %v649_v34 = vpop.f32.mrb[5].mxu1 }
 0x15c   : > { %v650_v36 = vadd.f32 %v649_v34, %v394_v6  ;;  %v1000_v37 = vpop.f32.mrb[6].mxu1 }
 0x15d   : > { %748 = vst [vmem:[%s1499_s12 + $0x18] sm:$0xff] %v953_v28  ;;  %v955_v31 = vpack.c.bf16 %v577_v29, %v575_v25  ;;  %v962_v40 = vpack.c.bf16 %v658_v33, %v658_v33  ;;  %v661_v41 = vadd.f32 %v1000_v37, %v394_v6  ;;  %v652_v42 = vpop.f32.mrb[7].mxu1 }
 0x15e   : > { %v958_v45 = vpack.c.bf16 %v650_v36, %v650_v36  ;;  %v653_v46 = vadd.f32 %v652_v42, %v394_v6 }
 0x15f   : > { %750 = vst [vmem:[%s1499_s12 + $0x24] sm:$0xff] %v955_v31  ;;  %v580_v35 = vpop.f32.mrb[8].mxu0  ;;  %757 = vst [vmem:[%s1499_s12 + $0x50] sm:$0xf] %v962_v40  ;;  %v964_v49 = vpack.c.bf16 %v661_v41, %v661_v41 }
 0x160   : > { %v581_v38 = vadd.f32 %v580_v35, %v1490_v60  ;;  %v582_v39 = vpop.f32.mrb[9].mxu0  ;;  %753 = vst [vmem:[%s1499_s12 + $0x38] sm:$0xf] %v958_v45  ;;  %v960_v52 = vpack.c.bf16 %v653_v46, %v653_v46 }
 0x161   : > { %v583_v43 = vadd.f32 %v582_v39, %v1492_v61  ;;  %v584_v44 = vpop.f32.mrb[10].mxu0  ;;  %759 = vst [vmem:[%s1499_s12 + $0x5c] sm:$0xf] %v964_v49 }
 0x162   : > { %v585_v47 = vadd.f32 %v584_v44, %v1490_v60  ;;  %v586_v48 = vpop.f32.mrb[11].mxu0  ;;  %755 = vst [vmem:[%s1499_s12 + $0x44] sm:$0xf] %v960_v52 }
 0x163   : > { %v957_v50 = vpack.c.bf16 %v583_v43, %v581_v38  ;;  %v587_v51 = vadd.f32 %v586_v48, %v1492_v61 }
 0x165   : > { %752 = vst [vmem:[%s1499_s12 + $0x30] sm:$0xff] %v957_v50  ;;  %v959_v53 = vpack.c.bf16 %v587_v51, %v585_v47 }
 0x167   : > { %754 = vst [vmem:[%s1499_s12 + $0x3c] sm:$0xff] %v959_v53  ;;  %v590_v54 = vpop.f32.mrb[12].mxu0 }
 0x168   : > { %v591_v55 = vadd.f32 %v590_v54, %v1490_v60  ;;  %v592_v56 = vpop.f32.mrb[13].mxu0 }
 0x169   : > { %v593_v57 = vadd.f32 %v592_v56, %v1492_v61  ;;  %v594_v58 = vpop.f32.mrb[14].mxu0 }
 0x16a   : > { %v595_v59 = vadd.f32 %v594_v58, %v1490_v60  ;;  %v596_v62 = vpop.f32.mrb[15].mxu0 }
 0x16b   : > { %v961_v63 = vpack.c.bf16 %v593_v57, %v591_v55  ;;  %v597_v1 = vadd.f32 %v596_v62, %v1492_v61 }
 0x16d   : > { %756 = vst [vmem:[%s1499_s12 + $0x48] sm:$0xff] %v961_v63  ;;  %v963_v2 = vpack.c.bf16 %v597_v1, %v595_v59 }
 0x16f   : > { %758 = vst [vmem:[%s1499_s12 + $0x54] sm:$0xff] %v963_v2 }
 0x170   : > { %1186 = shalt.err (!%p1183_p9)
}
 0x171   : > { %s1187_s11 = scalar_lea.hbm %s1532_s28, 1536  ;;  %s1191_s8 = scalar_lea.hbm %s1590_s5, 3072 }
 0x172   : > { %p1188_p1 = scmp.ne.s32.totalorder %s1532_s28, %s1187_s11  ;;  %p1192_p7 = scmp.lt.u32.totalorder %s1532_s28, %s1590_s5 }
 0x173   : > { %p1193_p13 = scmp.lt.u32.totalorder %s1191_s8, %s1187_s11  ;;  %p1195_p6 = scmp.lt.u32.totalorder %s1187_s11, %s1532_s28 }
 0x174   : > { %p1189_p2 = pnand %p1188_p1, %p1397_p10 }
 0x175   : > { %p1194_p4 = por %p1193_p13, %p1192_p7 }
 0x176   : > { %p1190_p3 = pneg %p1189_p2 }
 0x177   : > { %p1196_p8 = por %p1195_p6, %p1194_p4 }
 0x179   : > { %p1197_p12 = pnand %p1196_p8, %p1190_p3 }
 0x17b   : > { %1200 = shalt.err (!%p1197_p12)
}
 0x17c   : > { %s1269_s27 = smov 192   ;;  %s1270_s26 = smov 12  }
 0x17d   : > { %1009 = dma.vmem_to_hbm [thread:$0]  (%p1397_p10), %s1534_s7, 1536, %s1532_s28, %s761_s21, %s1269_s27, %s1269_s27, %s1270_s26  }
 0x17e PF: > { %s792_s30 = sand.u32 1, %s1239_s18   ;;  %p1608_p11 = scmp.ne.s32.totalorder %s1598_s29, 0 }
 0x17f   : > { %p1609_p0 = scmp.ge.s32.totalorder %s1259_s23, 2  ;;  %s793_s25 = scalar_lea.sflag [#allocation4], %s792_s30 }
 0x181   : > { %p1020_p5 = pnand %p1609_p0, %p1608_p11 }
 0x183   : > { %1234 = dma.done.wait (!%p1020_p5), %s793_s25, 1536  }
 0x184   : > { %1236 = vsyncadd (!%p1020_p5), %s793_s25, 4294965760  ;;  %s22_s23 = sadd.s32 1, %s1259_s23   ;;  %s1610_s18 = smov %s1243_s19 }
 0x185   : > { %p19_p9 = scmp.ge.s32.totalorder %s22_s23, 4   ;;  %s1611_s19 = smov %s1247_s20 }
 0x186   : > { %s1612_s20 = smov %s1406_s15  ;;  %s1613_s21 = smov %s1255_s22 }
 0x187   : > { %s1614_s22 = smov %s1616_s9  ;;  %21 = sbr.rel (!%p19_p9) target bundleno = 7 (0x7), region = 95 }
 0x18e   :  { %798 = vsyncpa [#allocation3], 1 }
 0x18f   :  { %800 = vsyncpa [#allocation3 + $0x1], 1 }
 0x190   :  { %801 = vsyncpa [#allocation6], 1 }
 0x191   :  { %802 = vsyncpa [#allocation4], 1 }
 0x192   :  { %804 = vsyncpa [#allocation4 + $0x1], 1 }

</bundles_post_ra>
